<compile_context>
chip_gen: v5e
topology: v5e:2x2
jax: 0.10.0
libtpu: 0.0.40
codegen_flags: <defaults>
</compile_context>

<pallas_src>
import functools

import jax
import jax.numpy as jnp
from jax.experimental import pallas as pl
from jax.experimental.pallas import tpu as pltpu


def _round_up(x, m):
    return (x + m - 1) // m * m


def _vmem_estimate(tb, in_dim, th, out_p, n_h, x_bytes=4):
    """Rough per-step VMEM footprint (bytes) of the fused MLP kernel."""
    wbuf = 1 if n_h == 1 else 2                       # single vs double buffered weights
    weights = wbuf * 2 * (in_dim * th + th * out_p)   # bf16 weights
    biases = wbuf * 4 * th + 4 * out_p                # f32 biases
    x_tiles = 2 * tb * in_dim * x_bytes               # double-buffered x tiles
    out_tiles = 2 * tb * out_p * 4                    # double-buffered f32 out tiles
    acc = tb * out_p * 4                              # f32 accumulator scratch
    hidden = tb * th * 6                              # f32 h + bf16 copy (compiler scratch)
    return weights + biases + x_tiles + out_tiles + acc + hidden


def _mlp_kernel(x_ref, w1_ref, b1_ref, w2_ref, b2_ref, o_ref, acc_ref, *,
                bf16_epilogue):
    j = pl.program_id(1)                              # hidden-dim (reduction) axis

    @pl.when(j == 0)
    def _():
        acc_ref[...] = jnp.zeros_like(acc_ref)

    # Cast x to bf16 in-kernel (no wrapper HBM pass over the activations).
    x = x_ref[...].astype(jnp.bfloat16)
    h = jnp.dot(x, w1_ref[...], preferred_element_type=jnp.float32)
    if bf16_epilogue:
        # v6e/v7x: bf16 VALUs -> bias + ReLU in bf16 (half the VPU work / scratch).
        h = jnp.maximum(h.astype(jnp.bfloat16) + b1_ref[...].astype(jnp.bfloat16), 0.0)
    else:
        # v5e: no bf16 VALUs -> keep the epilogue in f32, single downcast for the MXU.
        h = jnp.maximum(h + b1_ref[...], 0.0).astype(jnp.bfloat16)
    acc_ref[...] += jnp.dot(h, w2_ref[...], preferred_element_type=jnp.float32)

    @pl.when(j == pl.num_programs(1) - 1)
    def _():
        o_ref[...] = (acc_ref[...] + b2_ref[...]).astype(o_ref.dtype)


def _spec(shape, index_map, single_buffer):
    if single_buffer:
        return pl.BlockSpec(shape, index_map, pipeline_mode=pl.Buffered(1))
    return pl.BlockSpec(shape, index_map)


@functools.partial(
    jax.jit,
    static_argnames=("out_dim", "block_batch", "hidden_block", "bf16_epilogue",
                     "vmem_limit", "single_buffer_weights"))
def _mlp_forward(x, w1_p, b1_p, w2_p, b2_p, *, out_dim, block_batch, hidden_block,
                 bf16_epilogue, vmem_limit, single_buffer_weights):
    batch, in_dim = x.shape
    hid_p = w1_p.shape[1]
    out_p = w2_p.shape[1]
    th = hidden_block
    n_h = hid_p // th

    # Batch tile: sublane multiple (8 for f32 x, 16 for bf16 x); cap so the
    # "parallel" axis has >=2 steps when batch is large (v7x megacore sharding).
    sub = max(8, 32 // x.dtype.itemsize)
    tb = max(sub, min(block_batch, batch))
    if batch >= 512:
        tb = min(tb, -(-batch // 2))
    tb = _round_up(tb, sub)
    if tb >= 256 and batch >= _round_up(tb, 256):
        tb = _round_up(tb, 256)                      # full MXU height on v6e/v7x
    n_b = pl.cdiv(batch, tb)                         # remainder tile: OOB rows dropped

    # Weights are single-buffered only when they are grid-constant (n_h == 1).
    resident = single_buffer_weights and (n_h == 1)

    kernel = functools.partial(_mlp_kernel, bf16_epilogue=bf16_epilogue)
    y_p = pl.pallas_call(
        kernel,
        out_shape=jax.ShapeDtypeStruct((batch, out_p), jnp.float32),
        grid=(n_b, n_h),
        in_specs=[
            pl.BlockSpec((tb, in_dim), lambda i, j: (i, 0)),          # streamed x tile
            _spec((in_dim, th), lambda i, j: (0, j), resident),       # layer-1 weights
            _spec((1, th), lambda i, j: (0, j), resident),            # layer-1 bias
            _spec((th, out_p), lambda i, j: (j, 0), resident),        # layer-2 weights
            _spec((1, out_p), lambda i, j: (0, 0), single_buffer_weights),  # layer-2 bias
        ],
        out_specs=pl.BlockSpec((tb, out_p), lambda i, j: (i, 0)),
        scratch_shapes=[pltpu.VMEM((tb, out_p), jnp.float32)],
        compiler_params=pltpu.CompilerParams(
            dimension_semantics=("parallel", "arbitrary"),
            vmem_limit_bytes=vmem_limit,
        ),
    )(x, w1_p, b1_p, w2_p, b2_p)

    # Lane slice only when the out dim was padded (kept lane-dense in the kernel).
    if out_p != out_dim:
        y_p = y_p[:, :out_dim]
    return y_p


class PallasMLPFeatureNet:
    """2-layer MLP (Linear -> ReLU -> Linear) with a fused Pallas TPU forward."""

    def __init__(self, w1, b1, w2, b2, *, block_batch=1024, hidden_block=None):
        in_dim, hidden = w1.shape
        out_dim = w2.shape[1]
        self.in_dim, self.hidden, self.out_dim = in_dim, hidden, out_dim
        self.block_batch = int(block_batch)
        self._single_buffer_weights = True

        kind = jax.devices()[0].device_kind.lower()
        # v5e has no bf16 VALUs -> keep the bias/ReLU epilogue in f32 there.
        self.bf16_epilogue = "v5" not in kind
        # Scoped-VMEM budget per generation (v7x: 64 MiB/TC; v5e/v6e: 128 MiB).
        if "v7" in kind:
            self.vmem_limit = 48 * 1024 * 1024
        elif "v5" in kind or "v6" in kind:
            self.vmem_limit = 100 * 1024 * 1024
        else:
            self.vmem_limit = 64 * 1024 * 1024

        out_p = _round_up(out_dim, 128)
        hid_base = _round_up(hidden, 128)
        if hidden_block is not None:
            th = min(_round_up(hidden_block, 128), hid_base)
        else:
            # Resident-weight path when it fits; otherwise tile the hidden dim.
            # TODO(synk): also tile in_dim/out_p for pathologically wide layers.
            tb_est = max(8, min(self.block_batch, 1024))
            n_h, th = 1, hid_base
            while th > 128 and (_vmem_estimate(tb_est, in_dim, th, out_p, n_h)
                                > 0.8 * self.vmem_limit):
                n_h += 1
                th = _round_up(-(-hid_base // n_h), 128)
        n_h = -(-hid_base // th)
        hid_p = th * n_h
        self.hidden_block = th

        # One-time padding / bf16 cast of the parameters (hoisted out of forward).
        f32 = jnp.float32
        self.w1_p = jnp.zeros((in_dim, hid_p), jnp.bfloat16).at[:, :hidden].set(
            jnp.asarray(w1, jnp.bfloat16))
        self.b1_p = jnp.zeros((1, hid_p), f32).at[:, :hidden].set(
            jnp.asarray(b1, f32).reshape(1, -1))
        self.w2_p = jnp.zeros((hid_p, out_p), jnp.bfloat16).at[:hidden, :out_dim].set(
            jnp.asarray(w2, jnp.bfloat16))
        self.b2_p = jnp.zeros((1, out_p), f32).at[:, :out_dim].set(
            jnp.asarray(b2, f32).reshape(1, -1))

    def _run(self, x, single_buffer):
        return _mlp_forward(
            x, self.w1_p, self.b1_p, self.w2_p, self.b2_p,
            out_dim=self.out_dim, block_batch=self.block_batch,
            hidden_block=self.hidden_block, bf16_epilogue=self.bf16_epilogue,
            vmem_limit=self.vmem_limit, single_buffer_weights=single_buffer)

    def __call__(self, x):
        if not self._single_buffer_weights:
            return self._run(x, False)
        try:
            return self._run(x, True)
        except Exception:
            # pl.Buffered(1) not supported on this jax build -> default buffering.
            self._single_buffer_weights = False
            return self._run(x, False)


class MyTaskNN:
    """Pallas analogue of the PyTorch module: forward(x) = feature_net(x)."""

    def __init__(self, feature_net):
        self.feature_net = feature_net

    def forward(self, x):
        return self.feature_net(x)

    def __call__(self, x):
        return self.forward(x)


def _init_params(key, in_dim, hidden_dim, out_dim, dtype=jnp.float32):
    # Deterministic init mimicking torch.nn.Linear default (uniform +-1/sqrt(fan_in)).
    k1, k2, k3, k4 = jax.random.split(key, 4)
    s1 = 1.0 / (in_dim ** 0.5)
    s2 = 1.0 / (hidden_dim ** 0.5)
    w1 = jax.random.uniform(k1, (in_dim, hidden_dim), dtype, -s1, s1)
    b1 = jax.random.uniform(k2, (hidden_dim,), dtype, -s1, s1)
    w2 = jax.random.uniform(k3, (hidden_dim, out_dim), dtype, -s2, s2)
    b2 = jax.random.uniform(k4, (out_dim,), dtype, -s2, s2)
    return w1, b1, w2, b2


def _mixed_ref(x, w1, b1, w2, b2, bf16_epilogue):
    # Reference with the same mixed-precision policy as the kernel.
    h = jnp.dot(x.astype(jnp.bfloat16), w1.astype(jnp.bfloat16),
                preferred_element_type=jnp.float32)
    if bf16_epilogue:
        h = jnp.maximum(h.astype(jnp.bfloat16) + b1.astype(jnp.bfloat16), 0.0)
    else:
        h = jnp.maximum(h + b1, 0.0).astype(jnp.bfloat16)
    return jnp.dot(h, w2.astype(jnp.bfloat16),
                   preferred_element_type=jnp.float32) + b2


if __name__ == "__main__":
    key = jax.random.PRNGKey(0)
    kx1, kx2, kp1, kp2 = jax.random.split(key, 4)

    # Case 1: small MLP -> resident-weight path (single hidden tile).
    batch, in_dim, hidden_dim, out_dim = 8, 32, 64, 16
    x = jax.random.normal(kx1, (batch, in_dim), jnp.float32)
    w1, b1, w2, b2 = _init_params(kp1, in_dim, hidden_dim, out_dim)
    model = MyTaskNN(PallasMLPFeatureNet(w1, b1, w2, b2))
    y = jax.block_until_ready(model(x))
    assert y.shape == (batch, out_dim)

    y_mix = _mixed_ref(x, w1, b1, w2, b2, model.feature_net.bf16_epilogue)
    y_f32 = jnp.maximum(x @ w1 + b1, 0.0) @ w2 + b2
    assert jnp.allclose(y, y_mix, atol=1e-2, rtol=1e-2)
    assert jnp.allclose(y, y_f32, atol=7.5e-2, rtol=7.5e-2)

    # Case 2: exercises batch remainder tiles and the hidden-tiled accumulator path.
    batch2, in_dim2, hidden2, out_dim2 = 24, 32, 256, 16
    x2 = jax.random.normal(kx2, (batch2, in_dim2), jnp.float32)
    w1b, b1b, w2b, b2b = _init_params(kp2, in_dim2, hidden2, out_dim2)
    model2 = MyTaskNN(PallasMLPFeatureNet(w1b, b1b, w2b, b2b,
                                          block_batch=16, hidden_block=128))
    y2 = jax.block_until_ready(model2(x2))
    assert y2.shape == (batch2, out_dim2)
    y2_mix = _mixed_ref(x2, w1b, b1b, w2b, b2b, model2.feature_net.bf16_epilogue)
    assert jnp.allclose(y2, y2_mix, atol=2e-2, rtol=2e-2)

    print("KERNEL_OK")
</pallas_src>

<mosaic_0001>
module attributes {stable_mosaic.version = 11 : i64} {
  func.func @_mlp_kernel(%arg0: i32, %arg1: i32, %arg2: memref<8x32xf32, #tpu.memory_space<vmem>>, %arg3: memref<32x128xbf16, #tpu.memory_space<vmem>>, %arg4: memref<1x128xf32, #tpu.memory_space<vmem>>, %arg5: memref<128x128xbf16, #tpu.memory_space<vmem>>, %arg6: memref<1x128xf32, #tpu.memory_space<vmem>>, %arg7: memref<8x128xf32, #tpu.memory_space<vmem>>, %arg8: memref<8x128xf32, #tpu.memory_space<vmem>>) attributes {dimension_semantics = [#tpu.dimension_semantics<parallel>, #tpu.dimension_semantics<arbitrary>], iteration_bounds = array<i64: 1, 1>, scalar_prefetch = 0 : i64, scratch_operands = 1 : i64, tpu.core_type = #tpu.core_type<tc>, window_params = [{transform_indices = @transform_0, window_bounds = array<i64: 8, 32>}, {pipeline_mode = #tpu.pipeline_mode<synchronous>, transform_indices = @transform_1, window_bounds = array<i64: 32, 128>}, {pipeline_mode = #tpu.pipeline_mode<synchronous>, transform_indices = @transform_2, window_bounds = array<i64: 1, 128>}, {pipeline_mode = #tpu.pipeline_mode<synchronous>, transform_indices = @transform_3, window_bounds = array<i64: 128, 128>}, {pipeline_mode = #tpu.pipeline_mode<synchronous>, transform_indices = @transform_4, window_bounds = array<i64: 1, 128>}, {transform_indices = @transform_5, window_bounds = array<i64: 8, 128>}]} {
    %c0_i32 = arith.constant 0 : i32
    %0 = arith.cmpi eq, %arg1, %c0_i32 : i32
    %1 = arith.extui %0 : i1 to i32
    %c0_i32_0 = arith.constant 0 : i32
    %2 = arith.cmpi ne, %1, %c0_i32_0 : i32
    scf.if %2 {
      %cst_16 = arith.constant 0.000000e+00 : f32
      %22 = vector.broadcast %cst_16 : f32 to vector<8x128xf32>
      %c0_17 = arith.constant 0 : index
      %c0_18 = arith.constant 0 : index
      %23 = vector.load %arg8[%c0_17, %c0_18] : memref<8x128xf32, #tpu.memory_space<vmem>>, vector<8x128xf32>
      tpu.vector_store %arg8[%c0_17, %c0_18], %22 {strides = array<i32>} : memref<8x128xf32, #tpu.memory_space<vmem>>, vector<8x128xf32>,
    } else {
    }
    %c0 = arith.constant 0 : index
    %c0_1 = arith.constant 0 : index
    %3 = vector.load %arg2[%c0, %c0_1] : memref<8x32xf32, #tpu.memory_space<vmem>>, vector<8x32xf32>
    %4 = arith.truncf %3 : vector<8x32xf32> to vector<8x32xbf16>
    %c0_2 = arith.constant 0 : index
    %c0_3 = arith.constant 0 : index
    %5 = vector.load %arg3[%c0_2, %c0_3] : memref<32x128xbf16, #tpu.memory_space<vmem>>, vector<32x128xbf16>
    %cst = arith.constant dense<0.000000e+00> : vector<8x128xf32>
    %6 = tpu.matmul %4, %5, %cst {dimension_numbers = #tpu.dot_dimension_numbers<[1], [0], [0], [1], [0, 0, 1, 1], [], []>} : vector<8x32xbf16>, vector<32x128xbf16>, vector<8x128xf32> -> vector<8x128xf32>
    %7 = arith.truncf %6 : vector<8x128xf32> to vector<8x128xbf16>
    %c0_4 = arith.constant 0 : index
    %c0_5 = arith.constant 0 : index
    %8 = vector.load %arg4[%c0_4, %c0_5] : memref<1x128xf32, #tpu.memory_space<vmem>>, vector<1x128xf32>
    %9 = arith.truncf %8 : vector<1x128xf32> to vector<1x128xbf16>
    %10 = vector.broadcast %9 : vector<1x128xbf16> to vector<8x128xbf16>
    %11 = arith.addf %7, %10 : vector<8x128xbf16>
    %cst_6 = arith.constant 0.000000e+00 : bf16
    %12 = vector.broadcast %cst_6 : bf16 to vector<8x128xbf16>
    %13 = arith.maximumf %11, %12 : vector<8x128xbf16>
    %c0_7 = arith.constant 0 : index
    %c0_8 = arith.constant 0 : index
    %14 = vector.load %arg8[%c0_7, %c0_8] : memref<8x128xf32, #tpu.memory_space<vmem>>, vector<8x128xf32>
    %c0_9 = arith.constant 0 : index
    %c0_10 = arith.constant 0 : index
    %15 = vector.load %arg5[%c0_9, %c0_10] : memref<128x128xbf16, #tpu.memory_space<vmem>>, vector<128x128xbf16>
    %cst_11 = arith.constant dense<0.000000e+00> : vector<8x128xf32>
    %16 = tpu.matmul %13, %15, %cst_11 {dimension_numbers = #tpu.dot_dimension_numbers<[1], [0], [0], [1], [0, 0, 1, 1], [], []>} : vector<8x128xbf16>, vector<128x128xbf16>, vector<8x128xf32> -> vector<8x128xf32>
    %17 = arith.addf %14, %16 : vector<8x128xf32>
    %c0_12 = arith.constant 0 : index
    %c0_13 = arith.constant 0 : index
    %18 = vector.load %arg8[%c0_12, %c0_13] : memref<8x128xf32, #tpu.memory_space<vmem>>, vector<8x128xf32>
    tpu.vector_store %arg8[%c0_12, %c0_13], %17 {strides = array<i32>} : memref<8x128xf32, #tpu.memory_space<vmem>>, vector<8x128xf32>,
    %c0_i32_14 = arith.constant 0 : i32
    %19 = arith.cmpi eq, %arg1, %c0_i32_14 : i32
    %20 = arith.extui %19 : i1 to i32
    %c0_i32_15 = arith.constant 0 : i32
    %21 = arith.cmpi ne, %20, %c0_i32_15 : i32
    scf.if %21 {
      %c0_16 = arith.constant 0 : index
      %c0_17 = arith.constant 0 : index
      %22 = vector.load %arg8[%c0_16, %c0_17] : memref<8x128xf32, #tpu.memory_space<vmem>>, vector<8x128xf32>
      %c0_18 = arith.constant 0 : index
      %c0_19 = arith.constant 0 : index
      %23 = vector.load %arg6[%c0_18, %c0_19] : memref<1x128xf32, #tpu.memory_space<vmem>>, vector<1x128xf32>
      %24 = vector.broadcast %23 : vector<1x128xf32> to vector<8x128xf32>
      %25 = arith.addf %22, %24 : vector<8x128xf32>
      %c0_20 = arith.constant 0 : index
      %c0_21 = arith.constant 0 : index
      %26 = vector.load %arg7[%c0_20, %c0_21] : memref<8x128xf32, #tpu.memory_space<vmem>>, vector<8x128xf32>
      tpu.vector_store %arg7[%c0_20, %c0_21], %25 {strides = array<i32>} : memref<8x128xf32, #tpu.memory_space<vmem>>, vector<8x128xf32>,
    } else {
    }
    return
  }
  func.func @transform_0(%arg0: i32, %arg1: i32) -> (i32, i32) {
    %c0_i32 = arith.constant 0 : i32
    %c0_i32_0 = arith.constant 0 : i32
    return %arg0, %c0_i32 : i32, i32
  }
  func.func @transform_1(%arg0: i32, %arg1: i32) -> (i32, i32) {
    %c0_i32 = arith.constant 0 : i32
    %c0_i32_0 = arith.constant 0 : i32
    return %c0_i32, %arg1 : i32, i32
  }
  func.func @transform_2(%arg0: i32, %arg1: i32) -> (i32, i32) {
    %c0_i32 = arith.constant 0 : i32
    %c0_i32_0 = arith.constant 0 : i32
    return %c0_i32, %arg1 : i32, i32
  }
  func.func @transform_3(%arg0: i32, %arg1: i32) -> (i32, i32) {
    %c0_i32 = arith.constant 0 : i32
    %c0_i32_0 = arith.constant 0 : i32
    return %arg1, %c0_i32 : i32, i32
  }
  func.func @transform_4(%arg0: i32, %arg1: i32) -> (i32, i32) {
    %c0_i32 = arith.constant 0 : i32
    %c0_i32_0 = arith.constant 0 : i32
    %c0_i32_1 = arith.constant 0 : i32
    return %c0_i32, %c0_i32_0 : i32, i32
  }
  func.func @transform_5(%arg0: i32, %arg1: i32) -> (i32, i32) {
    %c0_i32 = arith.constant 0 : i32
    %c0_i32_0 = arith.constant 0 : i32
    return %arg0, %c0_i32 : i32, i32
  }
}

module attributes {stable_mosaic.version = 11 : i64} {
  func.func @_mlp_kernel(%arg0: i32, %arg1: i32, %arg2: memref<8x32xf32, #tpu.memory_space<vmem>>, %arg3: memref<32x128xbf16, #tpu.memory_space<vmem>>, %arg4: memref<1x128xf32, #tpu.memory_space<vmem>>, %arg5: memref<128x128xbf16, #tpu.memory_space<vmem>>, %arg6: memref<1x128xf32, #tpu.memory_space<vmem>>, %arg7: memref<8x128xf32, #tpu.memory_space<vmem>>, %arg8: memref<8x128xf32, #tpu.memory_space<vmem>>) attributes {dimension_semantics = [#tpu.dimension_semantics<parallel>, #tpu.dimension_semantics<arbitrary>], iteration_bounds = array<i64: 1, 1>, scalar_prefetch = 0 : i64, scratch_operands = 1 : i64, tpu.core_type = #tpu.core_type<tc>, window_params = [{transform_indices = @transform_0, window_bounds = array<i64: 8, 32>}, {transform_indices = @transform_1, window_bounds = array<i64: 32, 128>}, {transform_indices = @transform_2, window_bounds = array<i64: 1, 128>}, {transform_indices = @transform_3, window_bounds = array<i64: 128, 128>}, {pipeline_mode = #tpu.pipeline_mode<synchronous>, transform_indices = @transform_4, window_bounds = array<i64: 1, 128>}, {transform_indices = @transform_5, window_bounds = array<i64: 8, 128>}]} {
    %c0_i32 = arith.constant 0 : i32
    %0 = arith.cmpi eq, %arg1, %c0_i32 : i32
    %1 = arith.extui %0 : i1 to i32
    %c0_i32_0 = arith.constant 0 : i32
    %2 = arith.cmpi ne, %1, %c0_i32_0 : i32
    scf.if %2 {
      %cst_16 = arith.constant 0.000000e+00 : f32
      %22 = vector.broadcast %cst_16 : f32 to vector<8x128xf32>
      %c0_17 = arith.constant 0 : index
      %c0_18 = arith.constant 0 : index
      %23 = vector.load %arg8[%c0_17, %c0_18] : memref<8x128xf32, #tpu.memory_space<vmem>>, vector<8x128xf32>
      tpu.vector_store %arg8[%c0_17, %c0_18], %22 {strides = array<i32>} : memref<8x128xf32, #tpu.memory_space<vmem>>, vector<8x128xf32>,
    } else {
    }
    %c0 = arith.constant 0 : index
    %c0_1 = arith.constant 0 : index
    %3 = vector.load %arg2[%c0, %c0_1] : memref<8x32xf32, #tpu.memory_space<vmem>>, vector<8x32xf32>
    %4 = arith.truncf %3 : vector<8x32xf32> to vector<8x32xbf16>
    %c0_2 = arith.constant 0 : index
    %c0_3 = arith.constant 0 : index
    %5 = vector.load %arg3[%c0_2, %c0_3] : memref<32x128xbf16, #tpu.memory_space<vmem>>, vector<32x128xbf16>
    %cst = arith.constant dense<0.000000e+00> : vector<8x128xf32>
    %6 = tpu.matmul %4, %5, %cst {dimension_numbers = #tpu.dot_dimension_numbers<[1], [0], [0], [1], [0, 0, 1, 1], [], []>} : vector<8x32xbf16>, vector<32x128xbf16>, vector<8x128xf32> -> vector<8x128xf32>
    %7 = arith.truncf %6 : vector<8x128xf32> to vector<8x128xbf16>
    %c0_4 = arith.constant 0 : index
    %c0_5 = arith.constant 0 : index
    %8 = vector.load %arg4[%c0_4, %c0_5] : memref<1x128xf32, #tpu.memory_space<vmem>>, vector<1x128xf32>
    %9 = arith.truncf %8 : vector<1x128xf32> to vector<1x128xbf16>
    %10 = vector.broadcast %9 : vector<1x128xbf16> to vector<8x128xbf16>
    %11 = arith.addf %7, %10 : vector<8x128xbf16>
    %cst_6 = arith.constant 0.000000e+00 : bf16
    %12 = vector.broadcast %cst_6 : bf16 to vector<8x128xbf16>
    %13 = arith.maximumf %11, %12 : vector<8x128xbf16>
    %c0_7 = arith.constant 0 : index
    %c0_8 = arith.constant 0 : index
    %14 = vector.load %arg8[%c0_7, %c0_8] : memref<8x128xf32, #tpu.memory_space<vmem>>, vector<8x128xf32>
    %c0_9 = arith.constant 0 : index
    %c0_10 = arith.constant 0 : index
    %15 = vector.load %arg5[%c0_9, %c0_10] : memref<128x128xbf16, #tpu.memory_space<vmem>>, vector<128x128xbf16>
    %cst_11 = arith.constant dense<0.000000e+00> : vector<8x128xf32>
    %16 = tpu.matmul %13, %15, %cst_11 {dimension_numbers = #tpu.dot_dimension_numbers<[1], [0], [0], [1], [0, 0, 1, 1], [], []>} : vector<8x128xbf16>, vector<128x128xbf16>, vector<8x128xf32> -> vector<8x128xf32>
    %17 = arith.addf %14, %16 : vector<8x128xf32>
    %c0_12 = arith.constant 0 : index
    %c0_13 = arith.constant 0 : index
    %18 = vector.load %arg8[%c0_12, %c0_13] : memref<8x128xf32, #tpu.memory_space<vmem>>, vector<8x128xf32>
    tpu.vector_store %arg8[%c0_12, %c0_13], %17 {strides = array<i32>} : memref<8x128xf32, #tpu.memory_space<vmem>>, vector<8x128xf32>,
    %c0_i32_14 = arith.constant 0 : i32
    %19 = arith.cmpi eq, %arg1, %c0_i32_14 : i32
    %20 = arith.extui %19 : i1 to i32
    %c0_i32_15 = arith.constant 0 : i32
    %21 = arith.cmpi ne, %20, %c0_i32_15 : i32
    scf.if %21 {
      %c0_16 = arith.constant 0 : index
      %c0_17 = arith.constant 0 : index
      %22 = vector.load %arg8[%c0_16, %c0_17] : memref<8x128xf32, #tpu.memory_space<vmem>>, vector<8x128xf32>
      %c0_18 = arith.constant 0 : index
      %c0_19 = arith.constant 0 : index
      %23 = vector.load %arg6[%c0_18, %c0_19] : memref<1x128xf32, #tpu.memory_space<vmem>>, vector<1x128xf32>
      %24 = vector.broadcast %23 : vector<1x128xf32> to vector<8x128xf32>
      %25 = arith.addf %22, %24 : vector<8x128xf32>
      %c0_20 = arith.constant 0 : index
      %c0_21 = arith.constant 0 : index
      %26 = vector.load %arg7[%c0_20, %c0_21] : memref<8x128xf32, #tpu.memory_space<vmem>>, vector<8x128xf32>
      tpu.vector_store %arg7[%c0_20, %c0_21], %25 {strides = array<i32>} : memref<8x128xf32, #tpu.memory_space<vmem>>, vector<8x128xf32>,
    } else {
    }
    return
  }
  func.func @transform_0(%arg0: i32, %arg1: i32) -> (i32, i32) {
    %c0_i32 = arith.constant 0 : i32
    %c0_i32_0 = arith.constant 0 : i32
    return %arg0, %c0_i32 : i32, i32
  }
  func.func @transform_1(%arg0: i32, %arg1: i32) -> (i32, i32) {
    %c0_i32 = arith.constant 0 : i32
    %c0_i32_0 = arith.constant 0 : i32
    return %c0_i32, %arg1 : i32, i32
  }
  func.func @transform_2(%arg0: i32, %arg1: i32) -> (i32, i32) {
    %c0_i32 = arith.constant 0 : i32
    %c0_i32_0 = arith.constant 0 : i32
    return %c0_i32, %arg1 : i32, i32
  }
  func.func @transform_3(%arg0: i32, %arg1: i32) -> (i32, i32) {
    %c0_i32 = arith.constant 0 : i32
    %c0_i32_0 = arith.constant 0 : i32
    return %arg1, %c0_i32 : i32, i32
  }
  func.func @transform_4(%arg0: i32, %arg1: i32) -> (i32, i32) {
    %c0_i32 = arith.constant 0 : i32
    %c0_i32_0 = arith.constant 0 : i32
    %c0_i32_1 = arith.constant 0 : i32
    return %c0_i32, %c0_i32_0 : i32, i32
  }
  func.func @transform_5(%arg0: i32, %arg1: i32) -> (i32, i32) {
    %c0_i32 = arith.constant 0 : i32
    %c0_i32_0 = arith.constant 0 : i32
    return %arg0, %c0_i32 : i32, i32
  }
}

</mosaic_0001>

<bundles_post_ra>
// kernel: _mlp_forward.1
= control target key start
LH: loop header
LB: loop body
LE: loop exit
PB: predicated region body
PF: predicated region fallthrough
CT: control target
= control target key end

     0   :  { %10 = vsyncpa [#allocation4], 0  ;;  %s443_s0 = inlined_call_operand.hbm [shape: f32[8,32], index: 0, kind: input, shape index: {}]   ;;  %s444_s1 = inlined_call_operand.hbm [shape: bf16[32,128], index: 1, kind: input, shape index: {}]   ;;  %s445_s2 = inlined_call_operand.vmem [shape: f32[1,128], index: 2, kind: input, shape index: {}]   ;;  %s446_s3 = inlined_call_operand.hbm [shape: bf16[128,128], index: 3, kind: input, shape index: {}]   ;;  %s447_s4 = inlined_call_operand.vmem [shape: f32[1,128], index: 4, kind: input, shape index: {}]   ;;  %s448_s5 = inlined_call_operand.hbm [shape: f32[8,128], index: 5, kind: output, shape index: {}]  }
   0x1   :  { %11 = vsyncpa [#allocation7], 0  ;;  %s28_s20 = sshll.u32 %s444_s1, 4  ;;  %s29_s20 = int_to_ptr.hbm [resolvable:$true] %s28_s20 }
   0x2   :  { %12 = vsyncpa [#allocation5], 0  ;;  %s389_s21 = smov [#allocation6]   ;;  %s18_s25 = sshll.u32 %s443_s0, 4  ;;  %s19_s25 = int_to_ptr.hbm [resolvable:$true] %s18_s25 }
   0x3   :  { %s30_s22 = sshll.u32 %s389_s21, 4  ;;  %s390_s26 = smov 64   ;;  %s31_s22 = int_to_ptr.vmem [resolvable:$true] %s30_s22 }
   0x4   :  { %s391_s27 = smov 4   ;;  %s392_s28 = smov [#allocation3]  }
   0x5   :  { %36 = dma.hbm_to_vmem [thread:$0]  %s29_s20, 256, %s31_s22, [#allocation7], %s390_s26, %s390_s26, %s391_s27  }
   0x6   :  { %s20_s29 = sshll.u32 %s392_s28, 4  ;;  %s43_s7 = sshll.u32 %s446_s3, 4  ;;  %s21_s29 = int_to_ptr.vmem [resolvable:$true] %s20_s29  ;;  %s44_s7 = int_to_ptr.hbm [resolvable:$true] %s43_s7 }
   0x7   :  { %23 = dma.hbm_to_vmem [thread:$0]  %s19_s25, 128, %s21_s29, [#allocation4]  }
   0x8   :  { %s393_s1 = smov [#allocation8]  }
   0x9   :  { %s45_s8 = sshll.u32 %s393_s1, 4  ;;  %s46_s8 = int_to_ptr.vmem [resolvable:$true] %s45_s8 }
   0xa   :  { %51 = dma.hbm_to_vmem [thread:$0]  %s44_s7, 1024, %s46_s8, [#allocation7], %s390_s26, %s390_s26, %s391_s27  }
   0xb   :  { %383 = dma.done.wait [#allocation4], 128  }
   0xc   :  { %384 = vsyncadd [#allocation4], 4294967168 }
   0xd   :  { %385 = dma.done.wait [#allocation7], 1280  }
   0xe   :  { %386 = vsyncadd [#allocation7], 4294966016  ;;  %v271_v0 = vld [vmem:[#allocation6 + $0x8] sm:$0xff]  ;;  %v270_v2 = vld [vmem:[#allocation6] sm:$0xff]  ;;  %vm90_vm0 = vcmask 261120   ;;  %s394_s11 = smov [#allocation9]  }
   0xf   :  { %v279_v1 = vld [vmem:[#allocation8 + $0x38] sm:$0xff]  ;;  %100 = vmatpush.bf16.msra.mxu0 %v271_v0  ;;  %v72_v3 = vld [vmem:[#allocation3] sm:$0xff]  ;;  %v278_v4 = vld [vmem:[#allocation8 + $0x30] sm:$0xff]  ;;  %s216_s12 = sshll.u32 %s394_s11, 4  ;;  %s218_s14 = sshll.u32 %s448_s5, 4  ;;  %s217_s12 = int_to_ptr.vmem [resolvable:$true] %s216_s12  ;;  %s219_s14 = int_to_ptr.hbm [resolvable:$true] %s218_s14 }
  0x10   :  { %186 = vmatpush.bf16.msra.mxu1 %v279_v1  ;;  %v73_v5 = vpack.c.bf16 %v72_v3, %v72_v3  ;;  %v277_v6 = vld [vmem:[#allocation8 + $0x28] sm:$0xff]  ;;  %v276_v7 = vld [vmem:[#allocation8 + $0x20] sm:$0xff]  ;;  %v275_v8 = vld [vmem:[#allocation8 + $0x18] sm:$0xff] }
  0x11   :  { %v274_v9 = vld [vmem:[#allocation8 + $0x10] sm:$0xff]  ;;  %v273_v10 = vld [vmem:[#allocation8 + $0x8] sm:$0xff]  ;;  %v272_v11 = vld [vmem:[#allocation8] sm:$0xff] }
  0x12   :  { %v108_v12 = vld [vmem:[%s445_s2] sm:$0x1] }
  0x13   :  { %101 = vmatpush.bf16.msra.mxu0 %v270_v2  ;;  %v109_v13 = vpack.c.bf16 %v108_v12, %v108_v12  ;;  %v286_v24 = vld [vmem:[%s447_s4] ss:$0 sm:$0xff] }
  0x14   :  { %187 = vmatpush.bf16.msra.mxu1 %v278_v4 }
  0x15   :  { %v111_v14 = vpack.i.b16 %v109_v13, %v109_v13 }
  0x16   :  { %237 = vmatmul.msk.bf16.vlgmr.msra.gmra.mxu0 %vm90_vm0, %v73_v5 }
  0x17   :  { %v113_v15 = vperm.slane %v111_v14, 0 }
  0x18   :  { %188 = vmatpush.bf16.msra.mxu1 %v277_v6 }
  0x19   :  { %v115_v18 = vunpack.c.l.bf16 %v113_v15 }
  0x1c   :  { %189 = vmatpush.bf16.msra.mxu1 %v276_v7 }
  0x20   :  { %190 = vmatpush.bf16.msra.mxu1 %v275_v8 }
  0x24   :  { %191 = vmatpush.bf16.msra.mxu1 %v274_v9 }
  0x28   :  { %192 = vmatpush.bf16.msra.mxu1 %v273_v10 }
  0x2c   :  { %193 = vmatpush.bf16.msra.mxu1 %v272_v11 }
  0x93   :  { %v103_v16 = vpop.f32.mrf.mxu0 }
  0x94   :  { %v107_v17 = vpack.c.bf16 %v103_v16, %v103_v16 }
  0x96   :  { %v114_v19 = vunpack.c.l.bf16 %v107_v17 }
  0x98   :  { %v116_v20 = vadd.f32 %v115_v18, %v114_v19 }
  0x9a   :  { %v119_v21 = vmax.f32 %v116_v20, 0.0 }
  0x9b   :  { %v105_v22 = vpop.f32.mrf.mxu0 }
  0x9c   :  { %v120_v23 = vpack.c.bf16 %v119_v21, %v119_v21 }
  0x9e   :  { %194 = vmatmul.bf16.vlgmr.msra.gmra.mxu1 %v120_v23 }
 0x11b   :  { %v195_v25 = vpop.f32.mrf.mxu1 }
 0x11c   :  { %v209_v26 = vadd.f32 %v286_v24, %v195_v25 }
 0x11e   :  { %210 = vst [vmem:[#allocation9] sm:$0xff] %v209_v26 }
 0x11f   :  { %221 = dma.vmem_to_hbm [thread:$0]  %s217_s12, 128, %s219_s14, [#allocation5]  }
 0x123   :  { %v197_v27 = vpop.f32.mrf.mxu1 }
 0x124   :  { %387 = dma.done.wait [#allocation5], 128  }
 0x125   :  { %388 = vsyncadd [#allocation5], 4294967168 }
 0x126   :  { %226 = vsyncpa [#allocation4], 1 }
 0x127   :  { %227 = vsyncpa [#allocation7], 1 }
 0x128   :  { %228 = vsyncpa [#allocation5], 1 }

// kernel: _mlp_forward.1
= control target key start
LH: loop header
LB: loop body
LE: loop exit
PB: predicated region body
PF: predicated region fallthrough
CT: control target
= control target key end

     0   :  { %10 = vsyncpa [#allocation4], 0  ;;  %s443_s0 = inlined_call_operand.hbm [shape: f32[8,32], index: 0, kind: input, shape index: {}]   ;;  %s444_s1 = inlined_call_operand.hbm [shape: bf16[32,128], index: 1, kind: input, shape index: {}]   ;;  %s445_s2 = inlined_call_operand.vmem [shape: f32[1,128], index: 2, kind: input, shape index: {}]   ;;  %s446_s3 = inlined_call_operand.hbm [shape: bf16[128,128], index: 3, kind: input, shape index: {}]   ;;  %s447_s4 = inlined_call_operand.vmem [shape: f32[1,128], index: 4, kind: input, shape index: {}]   ;;  %s448_s5 = inlined_call_operand.hbm [shape: f32[8,128], index: 5, kind: output, shape index: {}]  }
   0x1   :  { %11 = vsyncpa [#allocation7], 0  ;;  %s28_s20 = sshll.u32 %s444_s1, 4  ;;  %s29_s20 = int_to_ptr.hbm [resolvable:$true] %s28_s20 }
   0x2   :  { %12 = vsyncpa [#allocation5], 0  ;;  %s389_s21 = smov [#allocation6]   ;;  %s18_s25 = sshll.u32 %s443_s0, 4  ;;  %s19_s25 = int_to_ptr.hbm [resolvable:$true] %s18_s25 }
   0x3   :  { %s30_s22 = sshll.u32 %s389_s21, 4  ;;  %s390_s26 = smov 64   ;;  %s31_s22 = int_to_ptr.vmem [resolvable:$true] %s30_s22 }
   0x4   :  { %s391_s27 = smov 4   ;;  %s392_s28 = smov [#allocation3]  }
   0x5   :  { %36 = dma.hbm_to_vmem [thread:$0]  %s29_s20, 256, %s31_s22, [#allocation7], %s390_s26, %s390_s26, %s391_s27  }
   0x6   :  { %s20_s29 = sshll.u32 %s392_s28, 4  ;;  %s43_s7 = sshll.u32 %s446_s3, 4  ;;  %s21_s29 = int_to_ptr.vmem [resolvable:$true] %s20_s29  ;;  %s44_s7 = int_to_ptr.hbm [resolvable:$true] %s43_s7 }
   0x7   :  { %23 = dma.hbm_to_vmem [thread:$0]  %s19_s25, 128, %s21_s29, [#allocation4]  }
   0x8   :  { %s393_s1 = smov [#allocation8]  }
   0x9   :  { %s45_s8 = sshll.u32 %s393_s1, 4  ;;  %s46_s8 = int_to_ptr.vmem [resolvable:$true] %s45_s8 }
   0xa   :  { %51 = dma.hbm_to_vmem [thread:$0]  %s44_s7, 1024, %s46_s8, [#allocation7], %s390_s26, %s390_s26, %s391_s27  }
   0xb   :  { %383 = dma.done.wait [#allocation4], 128  }
   0xc   :  { %384 = vsyncadd [#allocation4], 4294967168 }
   0xd   :  { %385 = dma.done.wait [#allocation7], 1280  }
   0xe   :  { %386 = vsyncadd [#allocation7], 4294966016  ;;  %v271_v0 = vld [vmem:[#allocation6 + $0x8] sm:$0xff]  ;;  %v270_v2 = vld [vmem:[#allocation6] sm:$0xff]  ;;  %vm90_vm0 = vcmask 261120   ;;  %s394_s11 = smov [#allocation9]  }
   0xf   :  { %v279_v1 = vld [vmem:[#allocation8 + $0x38] sm:$0xff]  ;;  %100 = vmatpush.bf16.msra.mxu0 %v271_v0  ;;  %v72_v3 = vld [vmem:[#allocation3] sm:$0xff]  ;;  %v278_v4 = vld [vmem:[#allocation8 + $0x30] sm:$0xff]  ;;  %s216_s12 = sshll.u32 %s394_s11, 4  ;;  %s218_s14 = sshll.u32 %s448_s5, 4  ;;  %s217_s12 = int_to_ptr.vmem [resolvable:$true] %s216_s12  ;;  %s219_s14 = int_to_ptr.hbm [resolvable:$true] %s218_s14 }
  0x10   :  { %186 = vmatpush.bf16.msra.mxu1 %v279_v1  ;;  %v73_v5 = vpack.c.bf16 %v72_v3, %v72_v3  ;;  %v277_v6 = vld [vmem:[#allocation8 + $0x28] sm:$0xff]  ;;  %v276_v7 = vld [vmem:[#allocation8 + $0x20] sm:$0xff]  ;;  %v275_v8 = vld [vmem:[#allocation8 + $0x18] sm:$0xff] }
  0x11   :  { %v274_v9 = vld [vmem:[#allocation8 + $0x10] sm:$0xff]  ;;  %v273_v10 = vld [vmem:[#allocation8 + $0x8] sm:$0xff]  ;;  %v272_v11 = vld [vmem:[#allocation8] sm:$0xff] }
  0x12   :  { %v108_v12 = vld [vmem:[%s445_s2] sm:$0x1] }
  0x13   :  { %101 = vmatpush.bf16.msra.mxu0 %v270_v2  ;;  %v109_v13 = vpack.c.bf16 %v108_v12, %v108_v12  ;;  %v286_v24 = vld [vmem:[%s447_s4] ss:$0 sm:$0xff] }
  0x14   :  { %187 = vmatpush.bf16.msra.mxu1 %v278_v4 }
  0x15   :  { %v111_v14 = vpack.i.b16 %v109_v13, %v109_v13 }
  0x16   :  { %237 = vmatmul.msk.bf16.vlgmr.msra.gmra.mxu0 %vm90_vm0, %v73_v5 }
  0x17   :  { %v113_v15 = vperm.slane %v111_v14, 0 }
  0x18   :  { %188 = vmatpush.bf16.msra.mxu1 %v277_v6 }
  0x19   :  { %v115_v18 = vunpack.c.l.bf16 %v113_v15 }
  0x1c   :  { %189 = vmatpush.bf16.msra.mxu1 %v276_v7 }
  0x20   :  { %190 = vmatpush.bf16.msra.mxu1 %v275_v8 }
  0x24   :  { %191 = vmatpush.bf16.msra.mxu1 %v274_v9 }
  0x28   :  { %192 = vmatpush.bf16.msra.mxu1 %v273_v10 }
  0x2c   :  { %193 = vmatpush.bf16.msra.mxu1 %v272_v11 }
  0x93   :  { %v103_v16 = vpop.f32.mrf.mxu0 }
  0x94   :  { %v107_v17 = vpack.c.bf16 %v103_v16, %v103_v16 }
  0x96   :  { %v114_v19 = vunpack.c.l.bf16 %v107_v17 }
  0x98   :  { %v116_v20 = vadd.f32 %v115_v18, %v114_v19 }
  0x9a   :  { %v119_v21 = vmax.f32 %v116_v20, 0.0 }
  0x9b   :  { %v105_v22 = vpop.f32.mrf.mxu0 }
  0x9c   :  { %v120_v23 = vpack.c.bf16 %v119_v21, %v119_v21 }
  0x9e   :  { %194 = vmatmul.bf16.vlgmr.msra.gmra.mxu1 %v120_v23 }
 0x11b   :  { %v195_v25 = vpop.f32.mrf.mxu1 }
 0x11c   :  { %v209_v26 = vadd.f32 %v286_v24, %v195_v25 }
 0x11e   :  { %210 = vst [vmem:[#allocation9] sm:$0xff] %v209_v26 }
 0x11f   :  { %221 = dma.vmem_to_hbm [thread:$0]  %s217_s12, 128, %s219_s14, [#allocation5]  }
 0x123   :  { %v197_v27 = vpop.f32.mrf.mxu1 }
 0x124   :  { %387 = dma.done.wait [#allocation5], 128  }
 0x125   :  { %388 = vsyncadd [#allocation5], 4294967168 }
 0x126   :  { %226 = vsyncpa [#allocation4], 1 }
 0x127   :  { %227 = vsyncpa [#allocation7], 1 }
 0x128   :  { %228 = vsyncpa [#allocation5], 1 }

</bundles_post_ra>
